<compile_context>
chip_gen: v5e
topology: v5e:2x2
jax: 0.10.0
libtpu: 0.0.40
codegen_flags: <defaults>
</compile_context>

<pallas_src>
import math
import functools

import jax
import jax.numpy as jnp
from jax.experimental import pallas as pl
from jax.experimental.pallas import tpu as pltpu


def _softplus(x):
    # numerically stable softplus (torch.nn.Softplus, beta=1)
    return jnp.maximum(x, 0.0) + jnp.log1p(jnp.exp(-jnp.abs(x)))


def _round_up(x, m):
    return ((x + m - 1) // m) * m


def celegans_rollout_kernel(noise_ref, h0_ref, wA_ref, wB_ref,
                            one_minus_dtg_ref, bias_ref, out_ref, h_state,
                            *, hp):
    t = pl.program_id(0)

    @pl.when(t == 0)
    def _():
        h_state[...] = h0_ref[...]

    h = h_state[...]                                     # (Bp, Hp) f32
    sp = _softplus(h)                                    # VPU/EUP elementwise

    # fused matmul 1:  softplus(h) @ [ dtg*Wc^T | dtg*(Wc^T @ E^T) ]  -> (Bp, 2Hp)
    te = jnp.dot(sp, wA_ref[...], preferred_element_type=jnp.float32)
    ts = te[:, :hp]                                      # dt*gamma * trans
    es = te[:, hp:]                                      # dt*gamma * E(trans)

    # fused matmul 2:  [h | noise_t] @ [[dtg*(W_elec - diag(rowsum))],
    #                                   [sqrt(2dt)*sig^T]]            -> (Bp, Hp)
    hn = jnp.concatenate([h, noise_ref[0]], axis=-1)     # (Bp, 2Hp)
    mm2 = jnp.dot(hn, wB_ref[...], preferred_element_type=jnp.float32)

    # h' = h*(1 - dtg) - h*(dtg*trans) + dtg*E(trans)
    #      + dtg*h@W_elec_mod + sqrt(2dt)*noise@sig^T + dtg*v_rest
    h_new = h * (one_minus_dtg_ref[...] - ts) + es + mm2 + bias_ref[...]

    h_state[...] = h_new
    out_ref[0] = h_new


def celegans_rollout(hidden0, noise_seq, params, dt):
    """hidden0: (B, H) f32; noise_seq: (T, B, H) pre-drawn standard normals.

    Returns the full trajectory (T, B, H), i.e. forward() applied T times.
    """
    B, H = hidden0.shape
    T = noise_seq.shape[0]
    Bp = _round_up(B, 8)
    Hp = _round_up(H, 128)
    f32 = jnp.float32

    gamma = params["gamma"].reshape(1, H).astype(f32)
    v_rest = params["v_rest"].reshape(1, H).astype(f32)
    W_elec = params["W_elec"].astype(f32)
    sig = params["sig"].astype(f32)
    Wc = params["W_chem_w"].astype(f32)
    E = params["E_w"].astype(f32)

    # ---- host-side weight fusion (one-time, outside the recurrence) ----
    dtg = dt * gamma                               # (1, H)
    wc_t = Wc.T                                    # (H, H)
    w_comb = wc_t @ E.T                            # Wc^T @ E^T
    rowsum = jnp.sum(W_elec, axis=1)               # (H,)
    w_elec_mod = W_elec - jnp.diag(rowsum)         # folds the -h*rowsum term
    sig_scaled = math.sqrt(2.0 * dt) * sig.T       # folds sqrt(2*dt)

    def pad2(x, r, c):
        return jnp.pad(x, ((0, r - x.shape[0]), (0, c - x.shape[1])))

    wA = jnp.concatenate([pad2(wc_t * dtg, Hp, Hp),
                          pad2(w_comb * dtg, Hp, Hp)], axis=1)      # (Hp, 2Hp)
    wB = jnp.concatenate([pad2(w_elec_mod * dtg, Hp, Hp),
                          pad2(sig_scaled, Hp, Hp)], axis=0)        # (2Hp, Hp)
    one_minus_dtg = pad2(1.0 - dtg, 1, Hp)                          # (1, Hp)
    bias = pad2(dtg * v_rest, 1, Hp)                                # (1, Hp)

    h0 = pad2(hidden0.astype(f32), Bp, Hp)                          # (Bp, Hp)
    noise = jnp.pad(noise_seq.astype(f32),
                    ((0, 0), (0, Bp - B), (0, Hp - H)))             # (T, Bp, Hp)

    const = lambda shape: pl.BlockSpec(shape, lambda t: tuple(0 for _ in shape))

    traj = pl.pallas_call(
        functools.partial(celegans_rollout_kernel, hp=Hp),
        out_shape=jax.ShapeDtypeStruct((T, Bp, Hp), f32),
        grid_spec=pltpu.PrefetchScalarGridSpec(
            num_scalar_prefetch=0,
            grid=(T,),
            in_specs=[
                pl.BlockSpec((1, Bp, Hp), lambda t: (t, 0, 0)),  # noise_t (streamed)
                const((Bp, Hp)),        # h0           (resident)
                const((Hp, 2 * Hp)),    # wA           (resident)
                const((2 * Hp, Hp)),    # wB           (resident)
                const((1, Hp)),         # 1 - dt*gamma (resident)
                const((1, Hp)),         # dt*gamma*v_rest (resident)
            ],
            out_specs=pl.BlockSpec((1, Bp, Hp), lambda t: (t, 0, 0)),
            scratch_shapes=[pltpu.VMEM((Bp, Hp), f32)],   # hidden state carry
        ),
        compiler_params=pltpu.CompilerParams(
            dimension_semantics=("arbitrary",)),          # sequential recurrence
    )(noise, h0, wA, wB, one_minus_dtg, bias)

    return traj[:, :B, :H]


def reference_rollout(hidden0, noise_seq, params, dt):
    gamma = params["gamma"].reshape(1, -1)
    v_rest = params["v_rest"].reshape(1, -1)
    W_elec = params["W_elec"]
    rowsum = jnp.sum(W_elec, axis=1)
    sig_t = params["sig"].T
    wc_t = params["W_chem_w"].T
    e_t = params["E_w"].T

    def step(h, noise):
        trans = _softplus(h) @ wc_t
        F = (-h + trans @ e_t - h * trans + h @ W_elec
             - h * rowsum + v_rest) * gamma
        h_new = h + dt * F + math.sqrt(2.0 * dt) * (noise @ sig_t)
        return h_new, h_new

    _, traj = jax.lax.scan(step, hidden0, noise_seq)
    return traj


if __name__ == "__main__":
    B = 4          # batch
    H = 32         # connectome.num_neurons (hid_dim)
    T = 8          # fused rollout steps (each step == one PyTorch forward())
    dt = 0.001

    key = jax.random.PRNGKey(0)
    k_h, k_n, k_wc, k_e, k_we, k_sig, k_g, k_v = jax.random.split(key, 8)

    # Deterministic synthetic parameters (shapes from __init__; small random
    # values so the kernel math is exercised — the module's own init_weights
    # would zero the Linear layers).
    params = {
        "gamma":    1.0 + 0.1 * jax.random.normal(k_g, (1, H), jnp.float32),
        "v_rest":   0.1 * jax.random.normal(k_v, (1, H), jnp.float32),
        "W_elec":   0.1 * jax.random.normal(k_we, (H, H), jnp.float32),
        "sig":      jnp.eye(H, dtype=jnp.float32)
                    + 0.05 * jax.random.normal(k_sig, (H, H), jnp.float32),
        "W_chem_w": 0.1 * jax.random.normal(k_wc, (H, H), jnp.float32),
        "E_w":      0.1 * jax.random.normal(k_e, (H, H), jnp.float32),
    }
    # TODO(synk): J / get_skew_symmetric and the Win sensory MLP are unused by
    # forward(), so they are not materialized here; in-forward torch.randn is
    # replaced by a pre-drawn deterministic (T, B, H) noise tensor.

    hidden0 = jax.random.normal(k_h, (B, H), jnp.float32)
    noise_seq = jax.random.normal(k_n, (T, B, H), jnp.float32)

    out = celegans_rollout(hidden0, noise_seq, params, dt)
    out = jax.block_until_ready(out)

    ref = reference_rollout(hidden0, noise_seq, params, dt)
    assert out.shape == (T, B, H)
    assert jnp.allclose(out, ref, atol=1e-4, rtol=1e-4), "mismatch vs reference"

    print("KERNEL_OK")
</pallas_src>

<mosaic_0001>
module attributes {stable_mosaic.version = 11 : i64} {
  func.func @celegans_rollout_kernel(%arg0: i32, %arg1: memref<1x8x128xf32, #tpu.memory_space<vmem>>, %arg2: memref<8x128xf32, #tpu.memory_space<vmem>>, %arg3: memref<128x256xf32, #tpu.memory_space<vmem>>, %arg4: memref<256x128xf32, #tpu.memory_space<vmem>>, %arg5: memref<1x128xf32, #tpu.memory_space<vmem>>, %arg6: memref<1x128xf32, #tpu.memory_space<vmem>>, %arg7: memref<1x8x128xf32, #tpu.memory_space<vmem>>, %arg8: memref<8x128xf32, #tpu.memory_space<vmem>>) attributes {dimension_semantics = [#tpu.dimension_semantics<arbitrary>], iteration_bounds = array<i64: 8>, scalar_prefetch = 0 : i64, scratch_operands = 1 : i64, tpu.core_type = #tpu.core_type<tc>, window_params = [{transform_indices = @transform_0, window_bounds = array<i64: 1, 8, 128>}, {pipeline_mode = #tpu.pipeline_mode<synchronous>, transform_indices = @transform_1, window_bounds = array<i64: 8, 128>}, {pipeline_mode = #tpu.pipeline_mode<synchronous>, transform_indices = @transform_2, window_bounds = array<i64: 128, 256>}, {pipeline_mode = #tpu.pipeline_mode<synchronous>, transform_indices = @transform_3, window_bounds = array<i64: 256, 128>}, {pipeline_mode = #tpu.pipeline_mode<synchronous>, transform_indices = @transform_4, window_bounds = array<i64: 1, 128>}, {pipeline_mode = #tpu.pipeline_mode<synchronous>, transform_indices = @transform_5, window_bounds = array<i64: 1, 128>}, {transform_indices = @transform_6, window_bounds = array<i64: 1, 8, 128>}]} {
    %c0_i32 = arith.constant 0 : i32
    %0 = arith.cmpi eq, %arg0, %c0_i32 : i32
    %1 = arith.extui %0 : i1 to i32
    %c0_i32_0 = arith.constant 0 : i32
    %2 = arith.cmpi ne, %1, %c0_i32_0 : i32
    scf.if %2 {
      %c0_21 = arith.constant 0 : index
      %c0_22 = arith.constant 0 : index
      %34 = vector.load %arg2[%c0_21, %c0_22] : memref<8x128xf32, #tpu.memory_space<vmem>>, vector<8x128xf32>
      %c0_23 = arith.constant 0 : index
      %c0_24 = arith.constant 0 : index
      %35 = vector.load %arg8[%c0_23, %c0_24] : memref<8x128xf32, #tpu.memory_space<vmem>>, vector<8x128xf32>
      tpu.vector_store %arg8[%c0_23, %c0_24], %34 {strides = array<i32>} : memref<8x128xf32, #tpu.memory_space<vmem>>, vector<8x128xf32>,
    } else {
    }
    %c0 = arith.constant 0 : index
    %c0_1 = arith.constant 0 : index
    %3 = vector.load %arg8[%c0, %c0_1] : memref<8x128xf32, #tpu.memory_space<vmem>>, vector<8x128xf32>
    %cst = arith.constant 0.000000e+00 : f32
    %4 = vector.broadcast %cst : f32 to vector<8x128xf32>
    %5 = arith.maximumf %3, %4 : vector<8x128xf32>
    %6 = math.absf %3 : vector<8x128xf32>
    %cst_2 = arith.constant 0.000000e+00 : f32
    %7 = vector.broadcast %cst_2 : f32 to vector<8x128xf32>
    %8 = arith.subf %7, %6 : vector<8x128xf32>
    %9 = math.exp %8 : vector<8x128xf32>
    %10 = math.log1p %9 : vector<8x128xf32>
    %11 = arith.addf %5, %10 : vector<8x128xf32>
    %c0_3 = arith.constant 0 : index
    %c0_4 = arith.constant 0 : index
    %12 = vector.load %arg3[%c0_3, %c0_4] : memref<128x256xf32, #tpu.memory_space<vmem>>, vector<128x256xf32>
    %cst_5 = arith.constant dense<0.000000e+00> : vector<8x256xf32>
    %13 = tpu.matmul %11, %12, %cst_5 {dimension_numbers = #tpu.dot_dimension_numbers<[1], [0], [0], [1], [0, 0, 1, 1], [], []>} : vector<8x128xf32>, vector<128x256xf32>, vector<8x256xf32> -> vector<8x256xf32>
    %14 = vector.extract_strided_slice %13 {offsets = [0, 0], sizes = [8, 128], strides = [1, 1]} : vector<8x256xf32> to vector<8x128xf32>
    %15 = vector.extract_strided_slice %13 {offsets = [0, 128], sizes = [8, 128], strides = [1, 1]} : vector<8x256xf32> to vector<8x128xf32>
    %c0_6 = arith.constant 0 : index
    %c0_7 = arith.constant 0 : index
    %c0_8 = arith.constant 0 : index
    %16 = vector.load %arg1[%c0_6, %c0_7, %c0_8] : memref<1x8x128xf32, #tpu.memory_space<vmem>>, vector<1x8x128xf32>
    %17 = vector.shape_cast %16 : vector<1x8x128xf32> to vector<8x128xf32>
    %18 = tpu.concatenate %3, %17 in 1 : vector<8x128xf32>, vector<8x128xf32> -> vector<8x256xf32>
    %c0_9 = arith.constant 0 : index
    %c0_10 = arith.constant 0 : index
    %19 = vector.load %arg4[%c0_9, %c0_10] : memref<256x128xf32, #tpu.memory_space<vmem>>, vector<256x128xf32>
    %cst_11 = arith.constant dense<0.000000e+00> : vector<8x128xf32>
    %20 = tpu.matmul %18, %19, %cst_11 {dimension_numbers = #tpu.dot_dimension_numbers<[1], [0], [0], [1], [0, 0, 1, 1], [], []>} : vector<8x256xf32>, vector<256x128xf32>, vector<8x128xf32> -> vector<8x128xf32>
    %c0_12 = arith.constant 0 : index
    %c0_13 = arith.constant 0 : index
    %21 = vector.load %arg5[%c0_12, %c0_13] : memref<1x128xf32, #tpu.memory_space<vmem>>, vector<1x128xf32>
    %22 = vector.broadcast %21 : vector<1x128xf32> to vector<8x128xf32>
    %23 = arith.subf %22, %14 : vector<8x128xf32>
    %24 = arith.mulf %3, %23 : vector<8x128xf32>
    %25 = arith.addf %24, %15 : vector<8x128xf32>
    %26 = arith.addf %25, %20 : vector<8x128xf32>
    %c0_14 = arith.constant 0 : index
    %c0_15 = arith.constant 0 : index
    %27 = vector.load %arg6[%c0_14, %c0_15] : memref<1x128xf32, #tpu.memory_space<vmem>>, vector<1x128xf32>
    %28 = vector.broadcast %27 : vector<1x128xf32> to vector<8x128xf32>
    %29 = arith.addf %26, %28 : vector<8x128xf32>
    %c0_16 = arith.constant 0 : index
    %c0_17 = arith.constant 0 : index
    %30 = vector.load %arg8[%c0_16, %c0_17] : memref<8x128xf32, #tpu.memory_space<vmem>>, vector<8x128xf32>
    tpu.vector_store %arg8[%c0_16, %c0_17], %29 {strides = array<i32>} : memref<8x128xf32, #tpu.memory_space<vmem>>, vector<8x128xf32>,
    %c0_18 = arith.constant 0 : index
    %c0_19 = arith.constant 0 : index
    %c0_20 = arith.constant 0 : index
    %31 = vector.load %arg7[%c0_18, %c0_19, %c0_20] : memref<1x8x128xf32, #tpu.memory_space<vmem>>, vector<1x8x128xf32>
    %32 = vector.shape_cast %31 : vector<1x8x128xf32> to vector<8x128xf32>
    %33 = vector.shape_cast %29 : vector<8x128xf32> to vector<1x8x128xf32>
    tpu.vector_store %arg7[%c0_18, %c0_19, %c0_20], %33 {strides = array<i32>} : memref<1x8x128xf32, #tpu.memory_space<vmem>>, vector<1x8x128xf32>,
    return
  }
  func.func @transform_0(%arg0: i32) -> (i32, i32, i32) {
    %c0_i32 = arith.constant 0 : i32
    %c0_i32_0 = arith.constant 0 : i32
    %c0_i32_1 = arith.constant 0 : i32
    return %arg0, %c0_i32, %c0_i32_0 : i32, i32, i32
  }
  func.func @transform_1(%arg0: i32) -> (i32, i32) {
    %c0_i32 = arith.constant 0 : i32
    %c0_i32_0 = arith.constant 0 : i32
    %c0_i32_1 = arith.constant 0 : i32
    return %c0_i32, %c0_i32_0 : i32, i32
  }
  func.func @transform_2(%arg0: i32) -> (i32, i32) {
    %c0_i32 = arith.constant 0 : i32
    %c0_i32_0 = arith.constant 0 : i32
    %c0_i32_1 = arith.constant 0 : i32
    return %c0_i32, %c0_i32_0 : i32, i32
  }
  func.func @transform_3(%arg0: i32) -> (i32, i32) {
    %c0_i32 = arith.constant 0 : i32
    %c0_i32_0 = arith.constant 0 : i32
    %c0_i32_1 = arith.constant 0 : i32
    return %c0_i32, %c0_i32_0 : i32, i32
  }
  func.func @transform_4(%arg0: i32) -> (i32, i32) {
    %c0_i32 = arith.constant 0 : i32
    %c0_i32_0 = arith.constant 0 : i32
    %c0_i32_1 = arith.constant 0 : i32
    return %c0_i32, %c0_i32_0 : i32, i32
  }
  func.func @transform_5(%arg0: i32) -> (i32, i32) {
    %c0_i32 = arith.constant 0 : i32
    %c0_i32_0 = arith.constant 0 : i32
    %c0_i32_1 = arith.constant 0 : i32
    return %c0_i32, %c0_i32_0 : i32, i32
  }
  func.func @transform_6(%arg0: i32) -> (i32, i32, i32) {
    %c0_i32 = arith.constant 0 : i32
    %c0_i32_0 = arith.constant 0 : i32
    %c0_i32_1 = arith.constant 0 : i32
    return %arg0, %c0_i32, %c0_i32_0 : i32, i32, i32
  }
}

</mosaic_0001>

<bundles_post_ra>
// kernel: tpu_custom_call.1
= control target key start
LH: loop header
LB: loop body
LE: loop exit
PB: predicated region body
PF: predicated region fallthrough
CT: control target
= control target key end

     0   :  { %11 = vsyncpa [#allocation4], 0  ;;  %s1136_s0 = inlined_call_operand.hbm [shape: f32[8,8,128], index: 0, kind: input, shape index: {}]   ;;  %s1137_s1 = inlined_call_operand.hbm [shape: f32[8,128], index: 1, kind: input, shape index: {}]   ;;  %s1138_s2 = inlined_call_operand.hbm [shape: f32[128,256], index: 2, kind: input, shape index: {}]   ;;  %s1139_s3 = inlined_call_operand.hbm [shape: f32[256,128], index: 3, kind: input, shape index: {}]   ;;  %s1140_s4 = inlined_call_operand.vmem [shape: f32[1,128], index: 4, kind: input, shape index: {}]   ;;  %s1141_s5 = inlined_call_operand.vmem [shape: f32[1,128], index: 5, kind: input, shape index: {}]   ;;  %s1142_s6 = inlined_call_operand.hbm [shape: f32[8,8,128], index: 6, kind: output, shape index: {}]  }
   0x1   :  { %13 = vsyncpa [#allocation4 + $0x1], 0 }
   0x2   :  { %14 = vsyncpa [#allocation7], 0 }
   0x3   :  { %15 = vsyncpa [#allocation10], 0 }
   0x4   :  { %16 = vsyncpa [#allocation5], 0 }
   0x5   :  { %18 = vsyncpa [#allocation5 + $0x1], 0  ;;  %s958_s21 = smov 0   ;;  %s960_s22 = smov 0  }
   0x6   :  { %s962_s23 = smov 0   ;;  %s964_s24 = smov 0  }
   0x7 LB: > { %s979_s25 = sadd.s32 4294967295, %s914_s24   ;;  %s614_s26 = sadd.s32 4294967294, %s914_s24   ;;  %s914_s24 = sphi %s964_s24, %s1153_s24   ;;  %s910_s23 = sphi %s962_s23, %s1152_s23   ;;  %s906_s22 = sphi %s960_s22, %s1151_s22   ;;  %s902_s21 = sphi %s958_s21, %s1150_s21  }
   0x8   : > { %p44_p0 = scmp.ne.s32.totalorder %s906_s22, %s902_s21  ;;  %p45_p1 = scmp.eq.s32.totalorder %s979_s25, 0 }
   0x9   : > { %p173_p2 = scmp.eq.s32.totalorder %s979_s25, 7  ;;  %p179_p3 = scmp.eq.s32.totalorder %s614_s26, 7 }
   0xa   : > { %p988_p4 = por %p45_p1, %p44_p0  ;;  %p615_p5 = scmp.ge.s32.totalorder %s914_s24, 1 }
   0xb   : > { %p993_p6 = por %p179_p3, %p44_p0  ;;  %p186_p7 = scmp.lt.s32.totalorder %s914_s24, 9 }
   0xc   : > { %s198_s7 = sshll.u32 %s1137_s1, 4  ;;  %s916_s9 = smov [#allocation6]   ;;  %s199_s7 = int_to_ptr.hbm [resolvable:$true] %s198_s7 }
   0xd   : > { %p1002_p9 = pnand %p615_p5, %p186_p7  ;;  %s200_s10 = sshll.u32 %s916_s9, 4  ;;  %s201_s10 = int_to_ptr.vmem [resolvable:$true] %s200_s10 }
   0xe   : > { %s209_s13 = sshll.u32 %s1138_s2, 4  ;;  %s917_s15 = smov [#allocation8]   ;;  %s210_s13 = int_to_ptr.hbm [resolvable:$true] %s209_s13 }
   0xf   : > { %p649_p10 = pneg %p1002_p9  ;;  %s211_s16 = sshll.u32 %s917_s15, 4  ;;  %s212_s16 = int_to_ptr.vmem [resolvable:$true] %s211_s16 }
  0x10   : > { %s918_s17 = smov 256   ;;  %s919_s18 = smov 16  }
  0x11   : > { %p1013_p11 = pnand %p649_p10, %p45_p1  ;;  %s223_s26 = sshll.u32 %s1139_s3, 4  ;;  %s224_s26 = int_to_ptr.hbm [resolvable:$true] %s223_s26 }
  0x12   : > { %s920_s29 = smov [#allocation9]   ;;  %s922_s9 = smov 8  }
  0x13   : > { %652 = dma.hbm_to_vmem [thread:$0]  (!%p1013_p11), %s199_s7, 128, %s201_s10, [#allocation7]  }
  0x14   : > { %655 = dma.hbm_to_vmem [thread:$0]  (!%p1013_p11), %s210_s13, 4096, %s212_s16, [#allocation7], %s918_s17, %s918_s17, %s919_s18  }
  0x15   : > { %s225_s30 = sshll.u32 %s920_s29, 4  ;;  %s921_s7 = smov 128   ;;  %s226_s30 = int_to_ptr.vmem [resolvable:$true] %s225_s30 }
  0x16   : > { %658 = dma.hbm_to_vmem [thread:$0]  (!%p1013_p11), %s224_s26, 4096, %s226_s30, [#allocation10], %s921_s7, %s921_s7, %s922_s9  }
  0x17   : > { %s1027_s10 = sadd.s32 1, %s914_s24   ;;  %s31_s12 = sadd.s32 1, %s910_s23 }
  0x18   : > { %s28_s11 = ssub.s32 %s914_s24, %s1027_s10  ;;  %p38_p13 = scmp.ne.s32.totalorder %s910_s23, %s906_s22 }
  0x19   : > { %p29_p12 = scmp.eq.s32.totalorder %s28_s11, 0  ;;  %p39_p0 = scmp.eq.s32.totalorder %s914_s24, 0 }
  0x1a   : > { %p1040_p3 = por %p173_p2, %p38_p13  ;;  %p670_p5 = scmp.lt.s32.totalorder %s914_s24, 8 }
  0x1b   : > { %s1036_s13 = scalar_select %p29_p12, %s910_s23, %s31_s12  }
  0x1c   : > { %s245_s16 = sand.u32 1, %s910_s23   ;;  %s621_s17 = sshll.u32 %s914_s24, 3 }
  0x1d   : > { %p40_p7 = por %p39_p0, %p38_p13  ;;  %s620_s14 = sshll.u32 %s245_s16, 3 }
  0x1e   : > { %s253_s20 = scalar_lea.hbm %s1136_s0, %s621_s17  ;;  %s249_s29 = scalar_lea.vmem [#allocation3], %s620_s14 }
  0x1f   : > { %s255_s26 = sshll.u32 %s253_s20, 4  ;;  %s257_s30 = sshll.u32 %s249_s29, 4  ;;  %s256_s26 = int_to_ptr.hbm [resolvable:$true] %s255_s26  ;;  %s258_s30 = int_to_ptr.vmem [resolvable:$true] %s257_s30 }
  0x20   : > { %p1050_p10 = pnand %p670_p5, %p40_p7  ;;  %s246_s9 = scalar_lea.sflag [#allocation4], %s245_s16 }
  0x21   : > { %s810_s11 = sshra.s32 %s256_s26, 4  ;;  %s817_s14 = scalar_lea.hbm %s1136_s0, 64  ;;  %s811_s11 = int_to_ptr.hbm [resolvable:$true] %s810_s11 }
  0x22   : > { %s812_s12 = scalar_lea.hbm %s811_s11, 8  ;;  %p814_p11 = pneg %p1050_p10 }
  0x23   : > { %p813_p2 = scmp.ne.s32.totalorder %s811_s11, %s812_s12  ;;  %p818_p0 = scmp.lt.s32.totalorder %s811_s11, %s1136_s0 }
  0x24   : > { %p819_p5 = scmp.lt.s32.totalorder %s817_s14, %s812_s12 }
  0x25   : > { %p815_p12 = pnand %p814_p11, %p813_p2 }
  0x26   : > { %p820_p7 = por %p819_p5, %p818_p0 }
  0x27   : > { %p816_p13 = pneg %p815_p12 }
  0x29   : > { %p821_p8 = pnand %p820_p7, %p816_p13 }
  0x2b   : > { %824 = shalt.err (!%p821_p8)
}
  0x2c   : > { %662 = dma.hbm_to_vmem [thread:$0]  (!%p1050_p10), %s256_s26, 128, %s258_s30, %s246_s9  }
  0x2d   : > { %266 = sbr.rel (%p1002_p9) target bundleno = 247 (0xf7), region = 44  ;;  %s1067_s16 = sand.u32 (!%p1002_p9), 1, %s906_s22  }
  0x2e   : > { %s623_s29 = sshll.u32 (!%p1002_p9), %s1067_s16, 3  ;;  %s269_s17 = scalar_lea.sflag (!%p1002_p9), [#allocation4], %s1067_s16 }
  0x2f   : > { %s1071_s18 = scalar_lea.vmem (!%p1002_p9), [#allocation3], %s623_s29 }
  0x32   : > { %885 = dma.done.wait (%p988_p4), %s269_s17, 128  }
  0x33   : > { %887 = vsyncadd (%p988_p4), %s269_s17, 4294967168 }
  0x34   : > { %889 = dma.done.wait (%p45_p1), [#allocation7], 4224  }
  0x35   : > { %891 = vsyncadd (%p45_p1), [#allocation7], 4294963072 }
  0x36   : > { %893 = dma.done.wait (%p45_p1), [#allocation10], 4096  }
  0x37   : > { %895 = vsyncadd (%p45_p1), [#allocation10], 4294963200  ;;  %s1085_s8 = scalar_lea.vmem [#allocation11], %s623_s29  ;;  %p1149_p8 = scmp.ne.s32.totalorder %s979_s25, 0 }
  0x39   : > { %320 = sbr.rel (%p1149_p8) target bundleno = 64 (0x40), region = 64 }
  0x3e   : > { %v321_v0 = vld [vmem:[#allocation6] sm:$0xff] }
  0x3f   : > { %322 = vst [vmem:[#allocation2] sm:$0xff] %v321_v0 }
  0x40 PF: > { %v427_v1 = vld [vmem:[#allocation9 + $0x78] sm:$0xff]  ;;  %v369_v3 = vld [vmem:[#allocation8 + $0xf0] sm:$0xff]  ;;  %v367_v6 = vld [vmem:[#allocation8 + $0xe0] sm:$0xff]  ;;  %s630_s30 = sshll.u32 %s979_s25, 3  ;;  %s512_s19 = sshll.u32 %s1085_s8, 4  ;;  %s513_s19 = int_to_ptr.vmem [resolvable:$true] %s512_s19 }
  0x41   : > { %v443_v2 = vld [vmem:[#allocation9 + $0xf8] sm:$0xff]  ;;  %444 = vmatpush.msra.mxu2 %v427_v1  ;;  %v426_v4 = vld [vmem:[#allocation9 + $0x70] sm:$0xff]  ;;  %371 = vmatpush.msra.mxu0 %v369_v3  ;;  %v425_v7 = vld [vmem:[#allocation9 + $0x68] sm:$0xff]  ;;  %s510_s11 = scalar_lea.hbm %s1142_s6, %s630_s30  ;;  %s500_s25 = scalar_lea.sflag [#allocation5], %s1067_s16 }
  0x42   : > { %464 = vmatpush.msra.mxu3 %v443_v2  ;;  %v442_v5 = vld [vmem:[#allocation9 + $0xf0] sm:$0xff]  ;;  %v441_v8 = vld [vmem:[#allocation9 + $0xe8] sm:$0xff]  ;;  %v370_v10 = vld [vmem:[#allocation8 + $0xf8] sm:$0xff]  ;;  %s514_s20 = sshll.u32 %s510_s11, 4  ;;  %s860_s26 = scalar_lea.hbm %s1142_s6, 64  ;;  %s515_s20 = int_to_ptr.hbm [resolvable:$true] %s514_s20 }
  0x43   : > { %445 = vmatpush.msra.mxu2 %v426_v4  ;;  %v365_v9 = vld [vmem:[#allocation8 + $0xd0] sm:$0xff]  ;;  %372 = vmatpush.msra.mxu0 %v367_v6  ;;  %v424_v11 = vld [vmem:[#allocation9 + $0x60] sm:$0xff]  ;;  %v368_v13 = vld [vmem:[#allocation8 + $0xe8] sm:$0xff]  ;;  %s854_s29 = sshra.s32 %s515_s20, 4  ;;  %s855_s29 = int_to_ptr.hbm [resolvable:$true] %s854_s29 }
  0x44   : > { %465 = vmatpush.msra.mxu3 %v442_v5  ;;  %391 = vmatpush.msra.mxu1 %v370_v10  ;;  %v440_v12 = vld [vmem:[#allocation9 + $0xe0] sm:$0xff]  ;;  %v366_v15 = vld [vmem:[#allocation8 + $0xd8] sm:$0xff]  ;;  %v361_v18 = vld [vmem:[#allocation8 + $0xb0] sm:$0xff]  ;;  %s856_s17 = scalar_lea.hbm %s855_s29, 8  ;;  %p861_p10 = scmp.lt.s32.totalorder %s855_s29, %s1142_s6 }
  0x45   : > { %446 = vmatpush.msra.mxu2 %v425_v7  ;;  %v363_v14 = vld [vmem:[#allocation8 + $0xc0] sm:$0xff]  ;;  %373 = vmatpush.msra.mxu0 %v365_v9  ;;  %v423_v16 = vld [vmem:[#allocation9 + $0x58] sm:$0xff]  ;;  %v364_v19 = vld [vmem:[#allocation8 + $0xc8] sm:$0xff]  ;;  %p857_p1 = scmp.ne.s32.totalorder %s855_s29, %s856_s17  ;;  %p862_p2 = scmp.lt.s32.totalorder %s860_s26, %s856_s17 }
  0x46   : > { %466 = vmatpush.msra.mxu3 %v441_v8  ;;  %392 = vmatpush.msra.mxu1 %v368_v13  ;;  %v439_v17 = vld [vmem:[#allocation9 + $0xd8] sm:$0xff]  ;;  %v422_v20 = vld [vmem:[#allocation9 + $0x50] sm:$0xff]  ;;  %v359_v22 = vld [vmem:[#allocation8 + $0xa0] sm:$0xff] }
  0x47   : > { %447 = vmatpush.msra.mxu2 %v424_v11  ;;  %374 = vmatpush.msra.mxu0 %v363_v14  ;;  %v438_v21 = vld [vmem:[#allocation9 + $0xd0] sm:$0xff]  ;;  %v362_v23 = vld [vmem:[#allocation8 + $0xb8] sm:$0xff]  ;;  %v421_v24 = vld [vmem:[#allocation9 + $0x48] sm:$0xff]  ;;  %p858_p4 = pnand %p857_p1, %p1040_p3  ;;  %p863_p11 = por %p862_p2, %p861_p10 }
  0x48   : > { %467 = vmatpush.msra.mxu3 %v440_v12  ;;  %393 = vmatpush.msra.mxu1 %v366_v15  ;;  %v437_v25 = vld [vmem:[#allocation9 + $0xc8] sm:$0xff]  ;;  %v357_v26 = vld [vmem:[#allocation8 + $0x90] sm:$0xff]  ;;  %v420_v28 = vld [vmem:[#allocation9 + $0x40] sm:$0xff] }
  0x49   : > { %448 = vmatpush.msra.mxu2 %v423_v16  ;;  %375 = vmatpush.msra.mxu0 %v361_v18  ;;  %v360_v27 = vld [vmem:[#allocation8 + $0xa8] sm:$0xff]  ;;  %v436_v29 = vld [vmem:[#allocation9 + $0xc0] sm:$0xff]  ;;  %v358_v31 = vld [vmem:[#allocation8 + $0x98] sm:$0xff]  ;;  %p859_p9 = pneg %p858_p4 }
  0x4a   : > { %468 = vmatpush.msra.mxu3 %v439_v17  ;;  %394 = vmatpush.msra.mxu1 %v364_v19  ;;  %v355_v30 = vld [vmem:[#allocation8 + $0x80] sm:$0xff]  ;;  %v419_v32 = vld [vmem:[#allocation9 + $0x38] sm:$0xff]  ;;  %v353_v34 = vld [vmem:[#allocation8 + $0x70] sm:$0xff] }
  0x4b   : > { %449 = vmatpush.msra.mxu2 %v422_v20  ;;  %376 = vmatpush.msra.mxu0 %v359_v22  ;;  %v435_v33 = vld [vmem:[#allocation9 + $0xb8] sm:$0xff]  ;;  %v356_v35 = vld [vmem:[#allocation8 + $0x88] sm:$0xff]  ;;  %v418_v36 = vld [vmem:[#allocation9 + $0x30] sm:$0xff]  ;;  %p864_p12 = pnand %p863_p11, %p859_p9 }
  0x4c   : > { %469 = vmatpush.msra.mxu3 %v438_v21  ;;  %395 = vmatpush.msra.mxu1 %v362_v23  ;;  %v434_v37 = vld [vmem:[#allocation9 + $0xb0] sm:$0xff]  ;;  %v351_v38 = vld [vmem:[#allocation8 + $0x60] sm:$0xff]  ;;  %v354_v39 = vld [vmem:[#allocation8 + $0x78] sm:$0xff] }
  0x4d   : > { %450 = vmatpush.msra.mxu2 %v421_v24  ;;  %377 = vmatpush.msra.mxu0 %v357_v26  ;;  %v417_v40 = vld [vmem:[#allocation9 + $0x28] sm:$0xff]  ;;  %v349_v42 = vld [vmem:[#allocation8 + $0x50] sm:$0xff]  ;;  %v416_v44 = vld [vmem:[#allocation9 + $0x20] sm:$0xff] }
  0x4e   : > { %470 = vmatpush.msra.mxu3 %v437_v25  ;;  %396 = vmatpush.msra.mxu1 %v360_v27  ;;  %v433_v41 = vld [vmem:[#allocation9 + $0xa8] sm:$0xff]  ;;  %v432_v45 = vld [vmem:[#allocation9 + $0xa0] sm:$0xff]  ;;  %v415_v48 = vld [vmem:[#allocation9 + $0x18] sm:$0xff] }
  0x4f   : > { %451 = vmatpush.msra.mxu2 %v420_v28  ;;  %378 = vmatpush.msra.mxu0 %v355_v30  ;;  %v352_v43 = vld [vmem:[#allocation8 + $0x68] sm:$0xff]  ;;  %v1089_v46 = vld [vmem:[#allocation2] sm:$0xff]  ;;  %v350_v49 = vld [vmem:[#allocation8 + $0x58] sm:$0xff] }
  0x50   : > { %471 = vmatpush.msra.mxu3 %v436_v29  ;;  %397 = vmatpush.msra.mxu1 %v358_v31  ;;  %v347_v47 = vld [vmem:[#allocation8 + $0x40] sm:$0xff]  ;;  %v325_v50 = vand.u32 2147483647, %v1089_v46  ;;  %v431_v51 = vld [vmem:[#allocation9 + $0x98] sm:$0xff]  ;;  %v345_v52 = vld [vmem:[#allocation8 + $0x30] sm:$0xff]  ;;  %v324_v13 = vmax.f32 %v1089_v46, 0.0 }
  0x51   : > { %452 = vmatpush.msra.mxu2 %v419_v32  ;;  %379 = vmatpush.msra.mxu0 %v353_v34  ;;  %v348_v53 = vld [vmem:[#allocation8 + $0x48] sm:$0xff]  ;;  %v414_v55 = vld [vmem:[#allocation9 + $0x10] sm:$0xff]  ;;  %v343_v57 = vld [vmem:[#allocation8 + $0x20] sm:$0xff] }
  0x52   : > { %472 = vmatpush.msra.mxu3 %v435_v33  ;;  %398 = vmatpush.msra.mxu1 %v356_v35  ;;  %v326_v54 = vsub.f32 0.0, %v325_v50  ;;  %v430_v56 = vld [vmem:[#allocation9 + $0x90] sm:$0xff]  ;;  %v346_v58 = vld [vmem:[#allocation8 + $0x38] sm:$0xff]  ;;  %v413_v60 = vld [vmem:[#allocation9 + $0x8] sm:$0xff] }
  0x53   : > { %453 = vmatpush.msra.mxu2 %v418_v36  ;;  %380 = vmatpush.msra.mxu0 %v351_v38  ;;  %v429_v61 = vld [vmem:[#allocation9 + $0x88] sm:$0xff]  ;;  %v341_v62 = vld [vmem:[#allocation8 + $0x10] sm:$0xff]  ;;  %v412_v0 = vld [vmem:[#allocation9] sm:$0xff] }
  0x54   : > { %473 = vmatpush.msra.mxu3 %v434_v37  ;;  %399 = vmatpush.msra.mxu1 %v354_v39  ;;  %v327_v59 = vmul.f32 1.442695, %v326_v54  ;;  %v344_v63 = vld [vmem:[#allocation8 + $0x28] sm:$0xff]  ;;  %v428_v1 = vld [vmem:[#allocation9 + $0x80] sm:$0xff]  ;;  %v342_v4 = vld [vmem:[#allocation8 + $0x18] sm:$0xff] }
  0x55   : > { %454 = vmatpush.msra.mxu2 %v417_v40  ;;  %381 = vmatpush.msra.mxu0 %v349_v42  ;;  %v411_v2 = vld [vmem:[%s1071_s18] sm:$0xff]  ;;  %v339_v3 = vld [vmem:[#allocation8] sm:$0xff] }
  0x56   : > { %474 = vmatpush.msra.mxu3 %v433_v41  ;;  %400 = vmatpush.msra.mxu1 %v352_v43  ;;  %716 = vpow2.f32 %v327_v59  ;;  %v340_v5 = vld [vmem:[#allocation8 + $0x8] sm:$0xff]  ;;  %v714_v17 = vld [vmem:[%s1140_s4] ss:$0 sm:$0xff] }
  0x57   : > { %455 = vmatpush.msra.mxu2 %v416_v44  ;;  %382 = vmatpush.msra.mxu0 %v347_v47  ;;  %v715_v26 = vld [vmem:[%s1141_s5] ss:$0 sm:$0xff] }
  0x58   : > { %475 = vmatpush.msra.mxu3 %v432_v45  ;;  %401 = vmatpush.msra.mxu1 %v350_v49 }
  0x59   : > { %456 = vmatpush.msra.mxu2 %v415_v48  ;;  %383 = vmatpush.msra.mxu0 %v345_v52 }
  0x5a   : > { %476 = vmatpush.msra.mxu3 %v431_v51  ;;  %402 = vmatpush.msra.mxu1 %v348_v53 }
  0x5b   : > { %457 = vmatpush.msra.mxu2 %v414_v55  ;;  %384 = vmatpush.msra.mxu0 %v343_v57 }
  0x5c   : > { %477 = vmatpush.msra.mxu3 %v430_v56  ;;  %403 = vmatpush.msra.mxu1 %v346_v58  ;;  %v717_v6 = vpop.eup %716 }
  0x5d   : > { %458 = vmatpush.msra.mxu2 %v413_v60  ;;  %385 = vmatpush.msra.mxu0 %v341_v62  ;;  %v329_v7 = vadd.f32 1.0, %v717_v6  ;;  %v332_v8 = vmul.f32 -0.5, %v717_v6  ;;  %v335_v10 = vand.u32 2147483647, %v717_v6 }
  0x5e   : > { %478 = vmatpush.msra.mxu3 %v429_v61  ;;  %404 = vmatpush.msra.mxu1 %v344_v63 }
  0x5f   : > { %459 = vmatpush.msra.mxu2 %v412_v0  ;;  %386 = vmatpush.msra.mxu0 %v339_v3  ;;  %718 = vlog2.f32 %v329_v7  ;;  %v333_v9 = vadd.f32 1.0, %v332_v8  ;;  %vm336_vm0 = vcmp.lt.f32.partialorder %v335_v10, 0.0004427343 }
  0x60   : > { %479 = vmatpush.msra.mxu3 %v428_v1  ;;  %460 = vmatmul.f32.vlgmr.msra.gmra.mxu2 %v1089_v46 }
  0x61   : > { %480 = vmatmul.f32.vlgmr.msra.gmra.mxu3 %v411_v2  ;;  %405 = vmatpush.msra.mxu1 %v342_v4  ;;  %v334_v11 = vmul.f32 %v717_v6, %v333_v9 }
  0x63   : > { %406 = vmatpush.msra.mxu1 %v340_v5 }
  0x65   : > { %v719_v12 = vpop.eup %718 }
  0x66   : > { %v331_v14 = vmul.f32 0.6931472, %v719_v12 }
  0x68   : > { %v337_v15 = vsel %vm336_vm0, %v334_v11, %v331_v14 }
  0x69   : > { %v338_v16 = vadd.f32 %v337_v15, %v324_v13 }
  0x6b   : > { %387 = vmatmul.f32.vlgmr.msra.gmra.mxu0 %v338_v16  ;;  %407 = vmatmul.f32.vlgmr.msra.gmra.mxu1 %v338_v16 }
  0xe3   : > { %v461_v18 = vpop.f32.mrf.mxu2 }
  0xe4   : > { %v481_v20 = vpop.f32.mrf.mxu3 }
  0xe5   : > { %v482_v24 = vadd.f32 %v481_v20, %v461_v18 }
  0xe8   : > { %v388_v19 = vpop.f32.mrf.mxu0  ;;  %v408_v22 = vpop.f32.mrf.mxu1 }
  0xe9   : > { %v488_v21 = vsub.f32 %v714_v17, %v388_v19 }
  0xeb   : > { %v489_v23 = vmul.f32 %v488_v21, %v1089_v46 }
  0xed   : > { %v490_v25 = vadd.f32 %v489_v23, %v408_v22 }
  0xef   : > { %v491_v27 = vadd.f32 %v490_v25, %v482_v24 }
  0xf1   : > { %v496_v28 = vadd.f32 %v715_v26, %v491_v27 }
  0xf3   : > { %497 = vst [vmem:[#allocation2] sm:$0xff] %v496_v28 }
  0xf4   : > { %498 = vst [vmem:[%s1085_s8] sm:$0xff] %v496_v28 }
  0xf5   : > { %867 = shalt.err (!%p864_p12)
}
  0xf6   : > { %647 = dma.vmem_to_hbm [thread:$0]  (%p1040_p3), %s513_s19, 128, %s515_s20, %s500_s25  }
  0xf7 PF: > { %p674_p13 = scmp.ge.s32.totalorder %s914_s24, 2  ;;  %s526_s16 = sand.u32 1, %s902_s21  }
  0xf8   : > { %s527_s8 = scalar_lea.sflag [#allocation5], %s526_s16 }
  0xf9   : > { %p664_p0 = pnand %p674_p13, %p993_p6 }
  0xfb   : > { %p665_p5 = pneg %p664_p0 }
  0xfd   : > { %897 = dma.done.wait (%p665_p5), %s527_s8, 128  }
  0xfe   : > { %899 = vsyncadd (%p665_p5), %s527_s8, 4294967168  ;;  %p21_p7 = scmp.ge.s32.totalorder %s1027_s10, 10   ;;  %s1150_s21 = smov %s906_s22 }
  0xff   : > { %s1151_s22 = smov %s910_s23  ;;  %s1152_s23 = smov %s1036_s13 }
 0x100   : > { %s1153_s24 = smov %s1027_s10  ;;  %23 = sbr.rel (!%p21_p7) target bundleno = 7 (0x7), region = 105 }
 0x105   :  { %533 = vsyncpa [#allocation4], 1 }
 0x106   :  { %535 = vsyncpa [#allocation4 + $0x1], 1 }
 0x107   :  { %536 = vsyncpa [#allocation7], 1 }
 0x108   :  { %537 = vsyncpa [#allocation10], 1 }
 0x109   :  { %538 = vsyncpa [#allocation5], 1 }
 0x10a   :  { %540 = vsyncpa [#allocation5 + $0x1], 1 }

</bundles_post_ra>
